<compile_context>
chip_gen: v7x
topology: tpu7x:2x2x1
jax: 0.10.0
libtpu: 0.0.40
codegen_flags: <defaults>
</compile_context>

<pallas_src>
import jax
import jax.numpy as jnp
from jax.experimental import pallas as pl
from jax.experimental.pallas import tpu as pltpu

LANES = 128
MAX_TILE_ROWS = 4096  # (4096, 128) f32 tile = 2 MiB/buffer; 4 buffers = 8 MiB (fits all chips)


def add_scalar_kernel(w_ref, x_ref, o_ref):
    # w_ref: (1,) scalar parameter in SMEM (whole array, untiled).
    # x_ref / o_ref: (TILE_M, 128) lane-dense VMEM tiles.
    o_ref[...] = x_ref[...] + w_ref[0]


def _add_scalar_2d(x2d: jax.Array, w: jax.Array, tile_m: int) -> jax.Array:
    m = x2d.shape[0]
    grid = (pl.cdiv(m, tile_m),)  # last block may be ragged; Pallas masks its stores
    return pl.pallas_call(
        add_scalar_kernel,
        out_shape=jax.ShapeDtypeStruct(x2d.shape, x2d.dtype),
        grid=grid,
        in_specs=[
            pl.BlockSpec(memory_space=pltpu.MemorySpace.SMEM),      # scalar weight, whole in SMEM
            pl.BlockSpec((tile_m, LANES), lambda i: (i, 0)),         # lane-dense input tile
        ],
        out_specs=pl.BlockSpec((tile_m, LANES), lambda i: (i, 0)),   # lane-dense output tile
        compiler_params=pltpu.CompilerParams(
            dimension_semantics=("parallel",),                       # shard across TCs on v7x
        ),
        cost_estimate=pl.CostEstimate(
            flops=x2d.size,
            transcendentals=0,
            bytes_accessed=2 * x2d.size * x2d.dtype.itemsize,
        ),
    )(w, x2d)


def meta_arch_add_rand_forward(x: jax.Array, weight: jax.Array) -> jax.Array:
    """Equivalent of TestMetaArchAddRand.forward: x + weight (scalar broadcast)."""
    orig_shape, orig_dtype = x.shape, x.dtype
    total = x.size

    # Keep the add native in x's dtype (bf16 stays bf16, f32 stays f32).
    w = weight.astype(orig_dtype).reshape(1)
    flat = x.reshape(-1)  # free for contiguous arrays

    if total % LANES == 0:
        # Fast path: lane-dense reshape is a free bitcast; no pad, no slice, no extra copies.
        m = total // LANES
        # tile_m == m ("equal full dim") when small, else 4096 (multiple of 8): both satisfy
        # the (8, 128) block-shape constraint.
        tile_m = m if m <= MAX_TILE_ROWS else MAX_TILE_ROWS
        out2d = _add_scalar_2d(flat.reshape(m, LANES), w, tile_m)
        return out2d.reshape(orig_shape)

    # Ragged path (size not a multiple of 128): pad by at most 127 elements.
    m = pl.cdiv(total, LANES)
    pad = m * LANES - total
    flat = jnp.pad(flat, (0, pad))
    tile_m = m if m <= MAX_TILE_ROWS else MAX_TILE_ROWS
    out2d = _add_scalar_2d(flat.reshape(m, LANES), w, tile_m)
    return out2d.reshape(-1)[:total].reshape(orig_shape)


if __name__ == "__main__":
    key = jax.random.PRNGKey(0)
    k_w, k_x1, k_x2, k_x3 = jax.random.split(key, 4)

    # Parameter: nn.Parameter(torch.rand(1)) -> uniform [0, 1), shape (1,)
    weight = jax.random.uniform(k_w, (1,), dtype=jnp.float32)

    # Primary small example input (NCHW, as the PyTorch module implies).
    x = jax.random.normal(k_x1, (2, 4, 16, 16), dtype=jnp.float32)
    out = jax.block_until_ready(meta_arch_add_rand_forward(x, weight))
    ref = x + weight[0]
    assert out.shape == x.shape and out.dtype == x.dtype
    assert jnp.allclose(out, ref, atol=1e-6, rtol=1e-6)

    # Extra check: size not a multiple of 128 lanes (exercises ragged/masked path).
    x_odd = jax.random.normal(k_x2, (2, 8, 33, 33), dtype=jnp.float32)
    out_odd = jax.block_until_ready(meta_arch_add_rand_forward(x_odd, weight))
    assert jnp.allclose(out_odd, x_odd + weight[0], atol=1e-6, rtol=1e-6)

    # Extra check: multiple grid steps (exercises pipelined tiling with a ragged last tile).
    x_big = jax.random.normal(k_x3, (1, 16, 160, 256), dtype=jnp.float32)
    out_big = jax.block_until_ready(meta_arch_add_rand_forward(x_big, weight))
    assert jnp.allclose(out_big, x_big + weight[0], atol=1e-6, rtol=1e-6)

    print("KERNEL_OK")
</pallas_src>

<mosaic_0001>
module attributes {stable_mosaic.version = 11 : i64} {
  func.func @add_scalar_kernel(%arg0: i32, %arg1: memref<1xf32, #tpu.memory_space<smem>>, %arg2: memref<16x128xf32, #tpu.memory_space<vmem>>, %arg3: memref<16x128xf32, #tpu.memory_space<vmem>>) attributes {dimension_semantics = [#tpu.dimension_semantics<parallel>], iteration_bounds = array<i64: 1>, scalar_prefetch = 0 : i64, scratch_operands = 0 : i64, tpu.core_type = #tpu.core_type<tc>, window_params = [{transform_indices = @transform_0, window_bounds = array<i64: 1>}, {transform_indices = @transform_1, window_bounds = array<i64: 16, 128>}, {transform_indices = @transform_2, window_bounds = array<i64: 16, 128>}]} {
    %c0 = arith.constant 0 : index
    %c0_0 = arith.constant 0 : index
    %0 = vector.load %arg2[%c0, %c0_0] : memref<16x128xf32, #tpu.memory_space<vmem>>, vector<16x128xf32>
    %c0_1 = arith.constant 0 : index
    %1 = memref.load %arg1[%c0_1] : memref<1xf32, #tpu.memory_space<smem>>
    %2 = vector.broadcast %1 : f32 to vector<16x128xf32>
    %3 = arith.addf %0, %2 : vector<16x128xf32>
    %c0_2 = arith.constant 0 : index
    %c0_3 = arith.constant 0 : index
    %4 = vector.load %arg3[%c0_2, %c0_3] : memref<16x128xf32, #tpu.memory_space<vmem>>, vector<16x128xf32>
    tpu.vector_store %arg3[%c0_2, %c0_3], %3 {strides = array<i32>} : memref<16x128xf32, #tpu.memory_space<vmem>>, vector<16x128xf32>,
    return
  }
  func.func @transform_0(%arg0: i32) -> i32 {
    %c0_i32 = arith.constant 0 : i32
    %c0_i32_0 = arith.constant 0 : i32
    return %c0_i32 : i32
  }
  func.func @transform_1(%arg0: i32) -> (i32, i32) {
    %c0_i32 = arith.constant 0 : i32
    %c0_i32_0 = arith.constant 0 : i32
    return %arg0, %c0_i32 : i32, i32
  }
  func.func @transform_2(%arg0: i32) -> (i32, i32) {
    %c0_i32 = arith.constant 0 : i32
    %c0_i32_0 = arith.constant 0 : i32
    return %arg0, %c0_i32 : i32, i32
  }
}

</mosaic_0001>

<bundles_post_ra>
// kernel: tpu_custom_call.1
= control target key start
LH: loop header
LB: loop body
LE: loop exit
PB: predicated region body
PF: predicated region fallthrough
CT: control target
= control target key end

     0   :  { %8 = vsyncpa [#allocation4], 0  ;;  %s156_s0 = inlined_call_operand.<no memory space> [shape: f32[1], index: 0, kind: input, shape index: {}]   ;;  %s157_s1 = inlined_call_operand.hbm [shape: f32[16,128], index: 1, kind: input, shape index: {}]   ;;  %s158_s2 = inlined_call_operand.hbm [shape: f32[16,128], index: 2, kind: output, shape index: {}]  }
   0x1   :  { %9 = vsyncpa [#allocation5], 0  ;;  %s104_s9 = smov [#allocation3]   ;;  %s56_s13 = scalar_lea.hbm %s157_s1, 256 }
   0x2   :  { %s17_s10 = sshll.u32 %s104_s9, 4  ;;  %p57_p0 = scmp.ne.s32.totalorder %s157_s1, %s56_s13  ;;  %s18_s10 = int_to_ptr.vmem [resolvable:$true] %s17_s10 }
   0x3   :  { %p60_p1 = scmp.lt.u32.totalorder %s56_s13, %s157_s1 }
   0x5   :  { %p62_p2 = pnand %p60_p1, %p57_p0 }
   0x7   :  { %65 = shalt.err (!%p62_p2)
}
   0x8   :  { %s66_s18 = scalar_lea.vmem %s18_s10, 256  ;;  %p71_p4 = scmp.lt.s32.totalorder %s18_s10, %s18_s10 }
   0x9   :  { %p67_p3 = scmp.ne.s32.totalorder %s18_s10, %s66_s18  ;;  %p72_p5 = scmp.lt.s32.totalorder %s66_s18, %s66_s18 }
   0xb   :  { %p73_p6 = por %p72_p5, %p71_p4 }
   0xd   :  { %p74_p7 = pnand %p73_p6, %p67_p3 }
   0xf   :  { %77 = shalt.err (!%p74_p7)
}
  0x10   :  { %s105_s19 = smov 128   ;;  %s106_s20 = smov 8  }
  0x11   :  { %23 = dma.hbm_to_vmem [thread:$0]  %s157_s1, 256, %s18_s10, [#allocation4], %s105_s19, %s105_s19, %s106_s20  }
  0x12   :  { %100 = dma.done.wait [#allocation4], 256  }
  0x13   :  { %101 = vsyncadd [#allocation4], 4294967040  ;;  %v30_v0 = vstv %s156_s0  ;;  %s107_s25 = smov [#allocation6]   ;;  %v27_v1 = vld [vmem:[#allocation3] sm:$0xff]  ;;  %v28_v2 = vld [vmem:[#allocation3 + $0x8] sm:$0xff] }
  0x14   :  { %s40_s26 = sshll.u32 %s107_s25, 4  ;;  %v31_v3 = vadd.f32 %v30_v0, %v27_v1  ;;  %v32_v4 = vadd.f32 %v30_v0, %v28_v2  ;;  %s41_s26 = int_to_ptr.vmem [resolvable:$true] %s40_s26 }
  0x15   :  { %s78_s27 = scalar_lea.vmem %s41_s26, 256  ;;  %p83_p9 = scmp.lt.s32.totalorder %s41_s26, %s41_s26 }
  0x16   :  { %33 = vst [vmem:[#allocation6] sm:$0xff] %v31_v3  ;;  %34 = vst [vmem:[#allocation6 + $0x8] sm:$0xff] %v32_v4  ;;  %p79_p8 = scmp.ne.s32.totalorder %s41_s26, %s78_s27  ;;  %p84_p10 = scmp.lt.s32.totalorder %s78_s27, %s78_s27 }
  0x18   :  { %p85_p11 = por %p84_p10, %p83_p9 }
  0x1a   :  { %p86_p12 = pnand %p85_p11, %p79_p8 }
  0x1c   :  { %89 = shalt.err (!%p86_p12)
}
  0x1d   :  { %s90_s0 = scalar_lea.hbm %s158_s2, 256 }
  0x1e   :  { %p91_p13 = scmp.ne.s32.totalorder %s158_s2, %s90_s0  ;;  %p94_p0 = scmp.lt.u32.totalorder %s90_s0, %s158_s2 }
  0x20   :  { %p96_p1 = pnand %p94_p0, %p91_p13 }
  0x22   :  { %99 = shalt.err (!%p96_p1)
}
  0x23   :  { %46 = dma.vmem_to_hbm [thread:$0]  %s41_s26, 256, %s158_s2, [#allocation5], %s105_s19, %s105_s19, %s106_s20  }
  0x24   :  { %102 = dma.done.wait [#allocation5], 256  }
  0x25   :  { %103 = vsyncadd [#allocation5], 4294967040 }
  0x26   :  { %50 = vsyncpa [#allocation4], 1 }
  0x27   :  { %51 = vsyncpa [#allocation5], 1 }

</bundles_post_ra>
